<compile_context>
chip_gen: v7x
topology: tpu7x:2x2x1
jax: 0.10.0
libtpu: 0.0.40
codegen_flags: <defaults>
</compile_context>

<pallas_src>
import functools

import jax
import jax.numpy as jnp
from jax import lax
from jax.experimental import pallas as pl
from jax.experimental.pallas import tpu as pltpu


def _bce_kernel(ignore_index, hw, need_mask,
                logits_ref, target_ref, sum_ref, cnt_ref,
                loss_acc, cnt_acc):
    j = pl.program_id(1)

    @pl.when(j == 0)
    def _():
        loss_acc[...] = jnp.zeros_like(loss_acc)
        cnt_acc[...] = jnp.zeros_like(cnt_acc)

    x = logits_ref[0].astype(jnp.float32)     # (C, tile_hw)  classes on sublanes
    t = target_ref[0]                         # (1, tile_hw)  int32
    tile_hw = x.shape[1]

    valid = t != ignore_index                 # (1, tile_hw) bool
    if need_mask:
        # Ragged last tile: mask out-of-range pixels and sanitize their logits
        # so garbage beyond the array bound can't produce NaN/Inf.
        lane = lax.broadcasted_iota(jnp.int32, (1, tile_hw), 1)
        in_range = (j * tile_hw + lane) < hw
        x = jnp.where(in_range, x, 0.0)
        valid = jnp.logical_and(valid, in_range)

    # Numerically stable log-softmax over the class (sublane) axis.
    m = jnp.max(x, axis=0, keepdims=True)                              # (1, tile_hw)
    shifted = x - m
    lse = jnp.log(jnp.sum(jnp.exp(shifted), axis=0, keepdims=True))    # (1, tile_hw)

    # Gather the shifted logit of the target class via a select + sublane sum
    # (no float one-hot matmul, no cross-lane traffic).
    cls_idx = lax.broadcasted_iota(jnp.int32, x.shape, 0)
    tgt_shifted = jnp.sum(jnp.where(cls_idx == t, shifted, 0.0),
                          axis=0, keepdims=True)                       # (1, tile_hw)

    # Vector (lane-parallel) accumulation; ignored / out-of-range pixels add 0.
    loss_acc[...] += jnp.where(valid, lse - tgt_shifted, 0.0)
    cnt_acc[...] += valid.astype(jnp.float32)

    @pl.when(j == pl.num_programs(1) - 1)
    def _():
        # Single cross-lane reduce per batch row, only on the last tile.
        sum_ref[0] = jnp.sum(loss_acc[...], axis=1, keepdims=True)     # (1, 1)
        cnt_ref[0] = jnp.sum(cnt_acc[...], axis=1, keepdims=True)      # (1, 1)


def balanced_cross_entropy(logits_nchw, target_nhw, ignore_index=255, tile_hw=None):
    """Equivalent of BalancedCrossEntropy(ignore_index).forward(input, target)
    with per_cls_weight=None (the module default).

    Note: if no pixel is valid, the result is NaN/Inf, matching
    F.cross_entropy(reduction='mean') behavior.
    """
    N, C, H, W = logits_nchw.shape
    HW = H * W

    if tile_hw is None:
        # Largest lane tile within ~3 MiB per logits buffer (double-buffered ->
        # comfortably under the 16/32 MiB scoped-VMEM defaults), capped at 16384.
        budget = 3 * 1024 * 1024
        max_lanes = max(128, (budget // (C * 4)) // 128 * 128)
        cap = min(16384, max_lanes)
        tile_hw = HW if HW <= cap else cap      # cap is a multiple of 128
    need_mask = (HW % tile_hw) != 0

    # Contiguity-preserving reshapes only; no transpose, no padding copy.
    logits = logits_nchw.reshape(N, C, HW)
    target = target_nhw.reshape(N, 1, HW).astype(jnp.int32)

    grid = (N, pl.cdiv(HW, tile_hw))
    kernel = functools.partial(_bce_kernel, ignore_index, HW, need_mask)

    loss_sum, valid_cnt = pl.pallas_call(
        kernel,
        out_shape=(
            jax.ShapeDtypeStruct((N, 1, 1), jnp.float32),
            jax.ShapeDtypeStruct((N, 1, 1), jnp.float32),
        ),
        grid_spec=pltpu.PrefetchScalarGridSpec(
            num_scalar_prefetch=0,
            grid=grid,
            in_specs=[
                pl.BlockSpec((1, C, tile_hw), lambda i, j: (i, 0, j)),
                pl.BlockSpec((1, 1, tile_hw), lambda i, j: (i, 0, j)),
            ],
            out_specs=[
                pl.BlockSpec((1, 1, 1), lambda i, j: (i, 0, 0)),
                pl.BlockSpec((1, 1, 1), lambda i, j: (i, 0, 0)),
            ],
            scratch_shapes=[
                pltpu.VMEM((1, tile_hw), jnp.float32),
                pltpu.VMEM((1, tile_hw), jnp.float32),
            ],
        ),
        compiler_params=pltpu.CompilerParams(
            dimension_semantics=("parallel", "arbitrary"),
        ),
    )(logits, target)

    return jnp.sum(loss_sum) / jnp.sum(valid_cnt)


def _reference(logits_nchw, target_nhw, ignore_index=255):
    # pure-JAX reference matching F.cross_entropy(..., ignore_index, reduction='mean')
    N, C, H, W = logits_nchw.shape
    x = jnp.transpose(logits_nchw, (0, 2, 3, 1)).reshape(-1, C).astype(jnp.float32)
    t = target_nhw.reshape(-1)
    logp = jax.nn.log_softmax(x, axis=-1)
    valid = t != ignore_index
    t_safe = jnp.where(valid, t, 0)
    nll = -jnp.take_along_axis(logp, t_safe[:, None], axis=-1)[:, 0]
    nll = jnp.where(valid, nll, 0.0)
    return jnp.sum(nll) / jnp.sum(valid.astype(jnp.float32))


if __name__ == "__main__":
    key = jax.random.PRNGKey(0)
    k1, k2, k3 = jax.random.split(key, 3)

    ignore_index = 255

    # Test 1: small shape, tile covers a full row (no ragged mask path).
    N, C, H, W = 2, 4, 16, 16
    logits = jax.random.normal(k1, (N, C, H, W), dtype=jnp.float32)
    target = jax.random.randint(k2, (N, H, W), 0, C, dtype=jnp.int32)
    ignore_mask = jax.random.bernoulli(k3, 0.1, (N, H, W))
    target = jnp.where(ignore_mask, ignore_index, target)

    loss = balanced_cross_entropy(logits, target, ignore_index=ignore_index)
    loss = jax.block_until_ready(loss)
    ref = _reference(logits, target, ignore_index=ignore_index)
    assert jnp.allclose(loss, ref, rtol=1e-5, atol=1e-5), (loss, ref)

    # Test 2: ragged last tile (HW not a multiple of tile_hw) exercises the
    # in-kernel iota mask path.
    k4, k5, k6 = jax.random.split(k3, 3)
    N2, C2, H2, W2 = 2, 4, 16, 18            # HW = 288, tile_hw = 128
    logits2 = jax.random.normal(k4, (N2, C2, H2, W2), dtype=jnp.float32)
    target2 = jax.random.randint(k5, (N2, H2, W2), 0, C2, dtype=jnp.int32)
    ignore_mask2 = jax.random.bernoulli(k6, 0.1, (N2, H2, W2))
    target2 = jnp.where(ignore_mask2, ignore_index, target2)

    loss2 = balanced_cross_entropy(logits2, target2, ignore_index=ignore_index,
                                   tile_hw=128)
    loss2 = jax.block_until_ready(loss2)
    ref2 = _reference(logits2, target2, ignore_index=ignore_index)
    assert jnp.allclose(loss2, ref2, rtol=1e-5, atol=1e-5), (loss2, ref2)

    print("KERNEL_OK")
</pallas_src>

<mosaic_0001>
module attributes {stable_mosaic.version = 11 : i64} {
  func.func @_bce_kernel(%arg0: i32, %arg1: i32, %arg2: memref<1x4x256xf32, #tpu.memory_space<vmem>>, %arg3: memref<1x1x256xi32, #tpu.memory_space<vmem>>, %arg4: memref<1x1x1xf32, #tpu.memory_space<vmem>>, %arg5: memref<1x1x1xf32, #tpu.memory_space<vmem>>, %arg6: memref<1x256xf32, #tpu.memory_space<vmem>>, %arg7: memref<1x256xf32, #tpu.memory_space<vmem>>) attributes {dimension_semantics = [#tpu.dimension_semantics<parallel>, #tpu.dimension_semantics<arbitrary>], iteration_bounds = array<i64: 2, 1>, scalar_prefetch = 0 : i64, scratch_operands = 2 : i64, tpu.core_type = #tpu.core_type<tc>, window_params = [{transform_indices = @transform_0, window_bounds = array<i64: 1, 4, 256>}, {transform_indices = @transform_1, window_bounds = array<i64: 1, 1, 256>}, {transform_indices = @transform_2, window_bounds = array<i64: 1, 1, 1>}, {transform_indices = @transform_3, window_bounds = array<i64: 1, 1, 1>}]} {
    %c0_i32 = arith.constant 0 : i32
    %0 = arith.cmpi eq, %arg1, %c0_i32 : i32
    %1 = arith.extui %0 : i1 to i32
    %c0_i32_0 = arith.constant 0 : i32
    %2 = arith.cmpi ne, %1, %c0_i32_0 : i32
    scf.if %2 {
      %cst_20 = arith.constant 0.000000e+00 : f32
      %38 = vector.broadcast %cst_20 : f32 to vector<1x256xf32>
      %c0_21 = arith.constant 0 : index
      %c0_22 = arith.constant 0 : index
      %39 = vector.load %arg6[%c0_21, %c0_22] : memref<1x256xf32, #tpu.memory_space<vmem>>, vector<1x256xf32>
      tpu.vector_store %arg6[%c0_21, %c0_22], %38 {strides = array<i32>} : memref<1x256xf32, #tpu.memory_space<vmem>>, vector<1x256xf32>,
      %cst_23 = arith.constant 0.000000e+00 : f32
      %40 = vector.broadcast %cst_23 : f32 to vector<1x256xf32>
      %c0_24 = arith.constant 0 : index
      %c0_25 = arith.constant 0 : index
      %41 = vector.load %arg7[%c0_24, %c0_25] : memref<1x256xf32, #tpu.memory_space<vmem>>, vector<1x256xf32>
      tpu.vector_store %arg7[%c0_24, %c0_25], %40 {strides = array<i32>} : memref<1x256xf32, #tpu.memory_space<vmem>>, vector<1x256xf32>,
    } else {
    }
    %c0 = arith.constant 0 : index
    %c0_1 = arith.constant 0 : index
    %c0_2 = arith.constant 0 : index
    %3 = vector.load %arg2[%c0, %c0_1, %c0_2] : memref<1x4x256xf32, #tpu.memory_space<vmem>>, vector<1x4x256xf32>
    %4 = vector.shape_cast %3 : vector<1x4x256xf32> to vector<4x256xf32>
    %c0_3 = arith.constant 0 : index
    %c0_4 = arith.constant 0 : index
    %c0_5 = arith.constant 0 : index
    %5 = vector.load %arg3[%c0_3, %c0_4, %c0_5] : memref<1x1x256xi32, #tpu.memory_space<vmem>>, vector<1x1x256xi32>
    %6 = vector.shape_cast %5 : vector<1x1x256xi32> to vector<1x256xi32>
    %c255_i32 = arith.constant 255 : i32
    %7 = vector.broadcast %c255_i32 : i32 to vector<1x256xi32>
    %8 = arith.cmpi ne, %6, %7 : vector<1x256xi32>
    %cst = arith.constant dense<0xFF800000> : vector<256xf32>
    %9 = vector.multi_reduction <maximumf>, %4, %cst [0] : vector<4x256xf32> to vector<256xf32>
    %10 = vector.shape_cast %9 : vector<256xf32> to vector<1x256xf32>
    %11 = vector.broadcast %10 : vector<1x256xf32> to vector<4x256xf32>
    %12 = arith.subf %4, %11 : vector<4x256xf32>
    %13 = math.exp %12 : vector<4x256xf32>
    %cst_6 = arith.constant dense<0.000000e+00> : vector<256xf32>
    %14 = vector.multi_reduction <add>, %13, %cst_6 [0] : vector<4x256xf32> to vector<256xf32>
    %15 = vector.shape_cast %14 : vector<256xf32> to vector<1x256xf32>
    %16 = math.log %15 : vector<1x256xf32>
    %17 = tpu.iota {dimensions = array<i32: 0>} : vector<4x256xi32>
    %18 = vector.broadcast %6 : vector<1x256xi32> to vector<4x256xi32>
    %19 = arith.cmpi eq, %17, %18 : vector<4x256xi32>
    %cst_7 = arith.constant 0.000000e+00 : f32
    %20 = vector.broadcast %cst_7 : f32 to vector<4x256xf32>
    %21 = arith.select %19, %12, %20 : vector<4x256xi1>, vector<4x256xf32>
    %cst_8 = arith.constant dense<0.000000e+00> : vector<256xf32>
    %22 = vector.multi_reduction <add>, %21, %cst_8 [0] : vector<4x256xf32> to vector<256xf32>
    %23 = vector.shape_cast %22 : vector<256xf32> to vector<1x256xf32>
    %c0_9 = arith.constant 0 : index
    %c0_10 = arith.constant 0 : index
    %24 = vector.load %arg6[%c0_9, %c0_10] : memref<1x256xf32, #tpu.memory_space<vmem>>, vector<1x256xf32>
    %25 = arith.subf %16, %23 : vector<1x256xf32>
    %cst_11 = arith.constant 0.000000e+00 : f32
    %26 = vector.broadcast %cst_11 : f32 to vector<1x256xf32>
    %27 = arith.select %8, %25, %26 : vector<1x256xi1>, vector<1x256xf32>
    %28 = arith.addf %24, %27 : vector<1x256xf32>
    %c0_12 = arith.constant 0 : index
    %c0_13 = arith.constant 0 : index
    %29 = vector.load %arg6[%c0_12, %c0_13] : memref<1x256xf32, #tpu.memory_space<vmem>>, vector<1x256xf32>
    tpu.vector_store %arg6[%c0_12, %c0_13], %28 {strides = array<i32>} : memref<1x256xf32, #tpu.memory_space<vmem>>, vector<1x256xf32>,
    %c0_14 = arith.constant 0 : index
    %c0_15 = arith.constant 0 : index
    %30 = vector.load %arg7[%c0_14, %c0_15] : memref<1x256xf32, #tpu.memory_space<vmem>>, vector<1x256xf32>
    %31 = arith.extui %8 : vector<1x256xi1> to vector<1x256xi32>
    %32 = arith.sitofp %31 : vector<1x256xi32> to vector<1x256xf32>
    %33 = arith.addf %30, %32 : vector<1x256xf32>
    %c0_16 = arith.constant 0 : index
    %c0_17 = arith.constant 0 : index
    %34 = vector.load %arg7[%c0_16, %c0_17] : memref<1x256xf32, #tpu.memory_space<vmem>>, vector<1x256xf32>
    tpu.vector_store %arg7[%c0_16, %c0_17], %33 {strides = array<i32>} : memref<1x256xf32, #tpu.memory_space<vmem>>, vector<1x256xf32>,
    %c0_i32_18 = arith.constant 0 : i32
    %35 = arith.cmpi eq, %arg1, %c0_i32_18 : i32
    %36 = arith.extui %35 : i1 to i32
    %c0_i32_19 = arith.constant 0 : i32
    %37 = arith.cmpi ne, %36, %c0_i32_19 : i32
    scf.if %37 {
      %c0_20 = arith.constant 0 : index
      %c0_21 = arith.constant 0 : index
      %38 = vector.load %arg6[%c0_20, %c0_21] : memref<1x256xf32, #tpu.memory_space<vmem>>, vector<1x256xf32>
      %cst_22 = arith.constant dense<0.000000e+00> : vector<1xf32>
      %39 = vector.multi_reduction <add>, %38, %cst_22 [1] : vector<1x256xf32> to vector<1xf32>
      %40 = vector.shape_cast %39 : vector<1xf32> to vector<1x1xf32>
      %c0_23 = arith.constant 0 : index
      %c0_24 = arith.constant 0 : index
      %c0_25 = arith.constant 0 : index
      %41 = vector.load %arg4[%c0_23, %c0_24, %c0_25] : memref<1x1x1xf32, #tpu.memory_space<vmem>>, vector<1x1x1xf32>
      %42 = vector.shape_cast %41 : vector<1x1x1xf32> to vector<1x1xf32>
      %43 = vector.shape_cast %40 : vector<1x1xf32> to vector<1x1x1xf32>
      tpu.vector_store %arg4[%c0_23, %c0_24, %c0_25], %43 {strides = array<i32>} : memref<1x1x1xf32, #tpu.memory_space<vmem>>, vector<1x1x1xf32>,
      %c0_26 = arith.constant 0 : index
      %c0_27 = arith.constant 0 : index
      %44 = vector.load %arg7[%c0_26, %c0_27] : memref<1x256xf32, #tpu.memory_space<vmem>>, vector<1x256xf32>
      %cst_28 = arith.constant dense<0.000000e+00> : vector<1xf32>
      %45 = vector.multi_reduction <add>, %44, %cst_28 [1] : vector<1x256xf32> to vector<1xf32>
      %46 = vector.shape_cast %45 : vector<1xf32> to vector<1x1xf32>
      %c0_29 = arith.constant 0 : index
      %c0_30 = arith.constant 0 : index
      %c0_31 = arith.constant 0 : index
      %47 = vector.load %arg5[%c0_29, %c0_30, %c0_31] : memref<1x1x1xf32, #tpu.memory_space<vmem>>, vector<1x1x1xf32>
      %48 = vector.shape_cast %47 : vector<1x1x1xf32> to vector<1x1xf32>
      %49 = vector.shape_cast %46 : vector<1x1xf32> to vector<1x1x1xf32>
      tpu.vector_store %arg5[%c0_29, %c0_30, %c0_31], %49 {strides = array<i32>} : memref<1x1x1xf32, #tpu.memory_space<vmem>>, vector<1x1x1xf32>,
    } else {
    }
    return
  }
  func.func @transform_0(%arg0: i32, %arg1: i32) -> (i32, i32, i32) {
    %c0_i32 = arith.constant 0 : i32
    %c0_i32_0 = arith.constant 0 : i32
    return %arg0, %c0_i32, %arg1 : i32, i32, i32
  }
  func.func @transform_1(%arg0: i32, %arg1: i32) -> (i32, i32, i32) {
    %c0_i32 = arith.constant 0 : i32
    %c0_i32_0 = arith.constant 0 : i32
    return %arg0, %c0_i32, %arg1 : i32, i32, i32
  }
  func.func @transform_2(%arg0: i32, %arg1: i32) -> (i32, i32, i32) {
    %c0_i32 = arith.constant 0 : i32
    %c0_i32_0 = arith.constant 0 : i32
    %c0_i32_1 = arith.constant 0 : i32
    return %arg0, %c0_i32, %c0_i32_0 : i32, i32, i32
  }
  func.func @transform_3(%arg0: i32, %arg1: i32) -> (i32, i32, i32) {
    %c0_i32 = arith.constant 0 : i32
    %c0_i32_0 = arith.constant 0 : i32
    %c0_i32_1 = arith.constant 0 : i32
    return %arg0, %c0_i32, %c0_i32_0 : i32, i32, i32
  }
}

</mosaic_0001>

<bundles_post_ra>
// kernel: tpu_custom_call.1
= control target key start
LH: loop header
LB: loop body
LE: loop exit
PB: predicated region body
PF: predicated region fallthrough
CT: control target
= control target key end

     0   :  { %9 = vsyncpa [#allocation5], 0  ;;  %s972_s0 = inlined_call_operand.hbm [shape: f32[2,4,256], index: 0, kind: input, shape index: {}]   ;;  %s973_s1 = inlined_call_operand.hbm [shape: s32[2,1,256], index: 1, kind: input, shape index: {}]   ;;  %s974_s2 = inlined_call_operand.vmem [shape: f32[2,1,1], index: 2, kind: output, shape index: {0}]   ;;  %s975_s3 = inlined_call_operand.vmem [shape: f32[2,1,1], index: 3, kind: output, shape index: {1}]  }
   0x1   :  { %11 = vsyncpa [#allocation5 + $0x1], 0 }
   0x2   :  { %12 = vsyncpa [#allocation7], 0 }
   0x3   :  { %14 = vsyncpa [#allocation7 + $0x1], 0  ;;  %s766_s12 = smov 0   ;;  %s768_s13 = smov 0  }
   0x4   :  { %s770_s14 = smov 0   ;;  %s772_s15 = smov 0  }
   0x5   :  { %s774_s16 = smov 0   ;;  %s776_s17 = smov 0  }
   0x6 LB: > { %s539_s18 = sadd.s32 4294967295, %s740_s17   ;;  %s32_s19 = sadd.s32 1, %s736_s16  ;;  %s740_s17 = sphi %s776_s17, %s20_s17   ;;  %s736_s16 = sphi %s774_s16, %s991_s16   ;;  %s732_s15 = sphi %s772_s15, %s990_s15   ;;  %s728_s14 = sphi %s770_s14, %s989_s14   ;;  %s724_s13 = sphi %s768_s13, %s988_s13   ;;  %s720_s12 = sphi %s766_s12, %s987_s12  }
   0x7   : > { %p34_p0 = scmp.ge.s32.totalorder %s32_s19, 2  ;;  %s41_s20 = sadd.s32 1, %s728_s14 }
   0x8   : > { %p48_p1 = scmp.ne.s32.totalorder %s728_s14, %s724_s13  ;;  %p49_p2 = scmp.eq.s32.totalorder %s740_s17, 0 }
   0x9   : > { %s993_s19 = smov (%p34_p0, %s32_s19), 0  ;;  %p54_p4 = scmp.ne.s32.totalorder %s724_s13, %s720_s12 }
   0xa   : > { %p802_p3 = por %p49_p2, %p48_p1  ;;  %s36_s22 = ssub.s32 %s736_s16, %s993_s19 }
   0xb   : > { %p55_p5 = scmp.eq.s32.totalorder %s539_s18, 0  ;;  %p39_p6 = scmp.eq.s32.totalorder %s36_s22, 0 }
   0xc   : > { %p568_p8 = scmp.lt.s32.totalorder %s740_s17, 2  ;;  %s818_s25 = sand.u32 1, %s728_s14  }
   0xd   : > { %p809_p7 = por %p55_p5, %p54_p4  ;;  %s555_s26 = sshll.u32 %s736_s16, 7 }
   0xe   : > { %s815_s24 = scalar_select %p39_p6, %s728_s14, %s41_s20  }
   0xf   : > { %s978_s23 = scalar_select %p809_p7, 1, 0 }
  0x10   : > { %s543_s27 = sshll.u32 %s818_s25, 3  ;;  %s825_s30 = scalar_lea.hbm %s972_s0, %s555_s26 }
  0x11   : > { %s162_s4 = scalar_lea.vmem [#allocation4], %s543_s27  ;;  %p829_p9 = pnand %p568_p8, %p802_p3 }
  0x12   : > { %s172_s5 = sshll.u32 %s162_s4, 4  ;;  %s159_s7 = scalar_lea.sflag [#allocation5], %s818_s25  ;;  %s833_s5 = int_to_ptr.vmem [resolvable:$true] %s172_s5 }
  0x13   : > { %s626_s8 = scalar_lea.hbm %s825_s30, 128  ;;  %p628_p13 = pneg %p829_p9 }
  0x14   : > { %p627_p12 = scmp.ne.s32.totalorder %s825_s30, %s626_s8  ;;  %s631_s11 = scalar_lea.hbm %s972_s0, 256 }
  0x15   : > { %p632_p2 = scmp.lt.u32.totalorder %s825_s30, %s972_s0  ;;  %p633_p3 = scmp.lt.u32.totalorder %s631_s11, %s626_s8 }
  0x16   : > { %p629_p0 = pnand %p628_p13, %p627_p12  ;;  %p635_p5 = scmp.lt.u32.totalorder %s626_s8, %s825_s30 }
  0x17   : > { %p634_p4 = por %p633_p3, %p632_p2 }
  0x18   : > { %p630_p1 = pneg %p629_p0 }
  0x19   : > { %p636_p6 = por %p635_p5, %p634_p4 }
  0x1b   : > { %p637_p8 = pnand %p636_p6, %p630_p1 }
  0x1d   : > { %640 = shalt.err (!%p637_p8)
}
  0x1e   : > { %s641_s20 = scalar_lea.vmem %s833_s5, 128  ;;  %s742_s21 = smov [#allocation4]  }
  0x1f   : > { %p642_p12 = scmp.ne.s32.totalorder %s833_s5, %s641_s20  ;;  %s646_s22 = sshll.u32 %s742_s21, 4  ;;  %s647_s22 = int_to_ptr.vmem [resolvable:$false] %s646_s22 }
  0x20   : > { %s648_s26 = scalar_lea.vmem %s647_s22, 256  ;;  %p649_p11 = scmp.lt.s32.totalorder %s833_s5, %s647_s22 }
  0x21   : > { %p644_p0 = pnand %p642_p12, %p628_p13  ;;  %p650_p2 = scmp.lt.s32.totalorder %s648_s26, %s641_s20 }
  0x23   : > { %p645_p10 = pneg %p644_p0  ;;  %p651_p3 = por %p650_p2, %p649_p11 }
  0x25   : > { %p652_p4 = pnand %p651_p3, %p645_p10 }
  0x27   : > { %655 = shalt.err (!%p652_p4)
}
  0x28   : > { %564 = dma.hbm_to_vmem [thread:$0]  (!%p829_p9), %s825_s30, 128, %s833_s5, %s159_s7  }
  0x29   : > { %p980_p1 = scmp.lt.s32.totalorder %s740_s17, 3  ;;  %p981_p5 = scmp.ge.s32.totalorder %s740_s17, 1 }
  0x2a   : > { %s546_s28 = sshll.u32 %s818_s25, 1  ;;  %s556_s29 = sshll.u32 %s736_s16, 5 }
  0x2b   : > { %p867_p6 = pnand %p981_p5, %p980_p1  ;;  %s876_s9 = scalar_lea.hbm %s973_s1, %s556_s29 }
  0x2c   : > { %s183_s10 = scalar_lea.vmem [#allocation6], %s546_s28  ;;  %s180_s30 = scalar_lea.sflag [#allocation7], %s818_s25 }
  0x2d   : > { %s982_s27 = scalar_select %p867_p6, 1, 0 }
  0x2e   : > { %s193_s11 = sshll.u32 %s183_s10, 4  ;;  %s656_s5 = scalar_lea.hbm %s876_s9, 32  ;;  %s194_s11 = int_to_ptr.vmem [resolvable:$true] %s193_s11 }
  0x2f   : > { %p657_p10 = scmp.ne.s32.totalorder %s876_s9, %s656_s5  ;;  %s661_s18 = scalar_lea.hbm %s973_s1, 64 }
  0x30   : > { %p662_p12 = scmp.lt.u32.totalorder %s876_s9, %s973_s1  ;;  %p663_p0 = scmp.lt.u32.totalorder %s661_s18, %s656_s5 }
  0x31   : > { %p659_p11 = pnand %p657_p10, %p628_p13  ;;  %p665_p3 = scmp.lt.u32.totalorder %s656_s5, %s876_s9 }
  0x32   : > { %p664_p2 = por %p663_p0, %p662_p12 }
  0x33   : > { %p660_p8 = pneg %p659_p11 }
  0x34   : > { %p666_p4 = por %p665_p3, %p664_p2 }
  0x36   : > { %p667_p1 = pnand %p666_p4, %p660_p8 }
  0x38   : > { %670 = shalt.err (!%p667_p1)
}
  0x39   : > { %s671_s25 = scalar_lea.vmem %s194_s11, 32  ;;  %s743_s22 = smov [#allocation6]  }
  0x3a   : > { %p672_p5 = scmp.ne.s32.totalorder %s194_s11, %s671_s25  ;;  %s676_s26 = sshll.u32 %s743_s22, 4  ;;  %s677_s26 = int_to_ptr.vmem [resolvable:$false] %s676_s26 }
  0x3b   : > { %s678_s28 = scalar_lea.vmem %s677_s26, 64  ;;  %p679_p7 = scmp.lt.s32.totalorder %s194_s11, %s677_s26 }
  0x3c   : > { %p674_p10 = pnand %p672_p5, %p628_p13  ;;  %p680_p6 = scmp.lt.s32.totalorder %s678_s28, %s671_s25 }
  0x3e   : > { %p675_p11 = pneg %p674_p10  ;;  %p681_p0 = por %p680_p6, %p679_p7 }
  0x40   : > { %p682_p12 = pnand %p681_p0, %p675_p11 }
  0x42   : > { %685 = shalt.err (!%p682_p12)
}
  0x43   : > { %567 = dma.hbm_to_vmem [thread:$0]  (!%p829_p9), %s876_s9, 32, %s194_s11, %s180_s30  }
  0x44   : > { %p983_p8 = scmp.ne.s32.totalorder %s982_s27, 0 }
  0x45   : > { %s204_s29 = sand.u32 (!%p983_p8), 1, %s724_s13   ;;  %p984_p13 = scmp.ne.s32.totalorder (!%p983_p8), %s978_s23, 0 }
  0x46   : > { %202 = sbr.rel (%p983_p8) target bundleno = 313 (0x139), region = 28  ;;  %s550_s4 = sshll.u32 (!%p983_p8), %s204_s29, 3 }
  0x47   : > { %s205_s8 = scalar_lea.sflag (!%p983_p8), [#allocation5], %s204_s29  ;;  %s208_s10 = scalar_lea.vmem (!%p983_p8), [#allocation4], %s550_s4 }
  0x4d   : > { %711 = dma.done.wait (%p984_p13), %s205_s8, 128  }
  0x4e   : > { %713 = vsyncadd (%p984_p13), %s205_s8, 4294967168  ;;  %s551_s5 = sshll.u32 %s204_s29, 1  ;;  %s214_s7 = scalar_lea.sflag [#allocation7], %s204_s29 }
  0x4f   : > { %s217_s6 = scalar_lea.vmem [#allocation6], %s551_s5 }
  0x50   : > { %715 = dma.done.wait (%p984_p13), %s214_s7, 32  }
  0x51   : > { %717 = vsyncadd (%p984_p13), %s214_s7, 4294967264  ;;  %v258_v0 = vlaneseq  ;;  %v744_v2 = vmov 0.0   ;;  %vm270_vm1 = vcmask 1043456   ;;  %v264_v3 = vld [vmem:[%s208_s10] sm:$0xff]  ;;  %v917_v4 = vld [vmem:[%s217_s6] sm:$0x3] }
  0x52   : > { %vm266_vm2 = vcmp.ne.s32.totalorder %v917_v4, 255  ;;  %v268_v5 = vcombine.high %v264_v3, %v264_v3  ;;  %v271_v6 = vsel %vm270_vm1, %v264_v3, -inf  ;;  %v745_v62 = vmov 1966171168   ;;  %p248_p7 = scmp.lt.s32.totalorder %s732_s15, 1 }
  0x53   : > { %vm909_vm0 = vcmp.lt.s32.totalorder %v258_v0, 256  ;;  %v272_v7 = vrot.slane %v271_v6, 4  ;;  %v552_v8 = vsel %vm266_vm2, 1.0, %v744_v2  ;;  %v314_v23 = vshrl.u32 %v258_v0, 7 }
  0x54   : > { %262 = vst.msk [vmem:[#allocation2] sm:$0x3] %vm909_vm0, %v744_v2  ;;  %263 = vst.msk [vmem:[#allocation3] sm:$0x3] %vm909_vm0, %v744_v2  ;;  %v278_v9 = vsel %vm270_vm1, %v268_v5, -inf  ;;  %v351_v63 = vunpack.c.l.s4 %v745_v62  ;;  %vm392_vm5 = vcmask 1040384  }
  0x55   : > { %v273_v11 = vmax.f32 %v271_v6, %v272_v7  ;;  %v279_v12 = vrot.slane %v278_v9, 4  ;;  %v926_v26 = vsub.s32 0, %v314_v23  ;;  %v928_v28 = vsub.s32 1, %v314_v23  ;;  %s995_s15 = smov (!%p248_p7, %s732_s15), 1 }
  0x56   : > { %v352_v6 = vunpack.c.0.s8 %v351_v63  ;;  %s250_s9 = scalar_lea.vmem %s974_s2, %s995_s15  ;;  %vm398_vm6 = vcmask 0   ;;  %s253_s12 = scalar_lea.vmem %s975_s3, %s995_s15 }
  0x57   : > { %v274_v14 = vrot.slane %v273_v11, 2  ;;  %v280_v15 = vmax.f32 %v278_v9, %v279_v12  ;;  %v318_v29 = vrot.slane %v917_v4, %v926_v26  ;;  %v322_v30 = vrot.slane %v917_v4, %v928_v28 }
  0x59   : > { %v275_v16 = vmax.f32 %v273_v11, %v274_v14  ;;  %v281_v17 = vrot.slane %v280_v15, 2  ;;  %vm323_vm3 = vcmp.eq.s32.totalorder %v314_v23, %v318_v29  ;;  %vm324_vm4 = vcmp.eq.s32.totalorder %v314_v23, %v322_v30 }
  0x5a   : > { %v355_v11 = vsub.s32 %v352_v6, %v314_v23 }
  0x5b   : > { %v372_v10 = vld [vmem:[#allocation3] sm:$0x3]  ;;  %v276_v18 = vrot.slane %v275_v16, 1  ;;  %v282_v19 = vmax.f32 %v280_v15, %v281_v17  ;;  %v344_v14 = vld [vmem:[#allocation2] sm:$0x3] }
  0x5c   : > { %v375_v13 = vadd.f32 %v552_v8, %v372_v10 }
  0x5d   : > { %v277_v20 = vmax.f32 %v275_v16, %v276_v18  ;;  %v283_v21 = vrot.slane %v282_v19, 1 }
  0x5e   : > { %376 = vst.msk [vmem:[#allocation3] sm:$0x3] %vm909_vm0, %v375_v13 }
  0x5f   : > { %v284_v22 = vmax.f32 %v282_v19, %v283_v21 }
  0x61   : > { %v287_v24 = vcombine.low %v277_v20, %v284_v22 }
  0x63   : > { %v289_v25 = vsub.f32 %v264_v3, %v287_v24 }
  0x65   : > { %v290_v27 = vmul.f32 1.442695, %v289_v25  ;;  %v326_v31 = vcombine.high %v289_v25, %v289_v25  ;;  %v328_v32 = vsel %vm323_vm3, %v289_v25, 0.0  ;;  %v400_v18 = vld [vmem:[#allocation3] sm:$0x3] }
  0x66   : > { %v330_v35 = vsel %vm270_vm1, %v328_v32, 0.0  ;;  %v405_v19 = vrot.slane %v400_v18, %v926_v26  ;;  %v409_v20 = vrot.slane %v400_v18, %v928_v28 }
  0x67   : > { %620 = vpow2.f32 %v290_v27  ;;  %v329_v33 = vsel %vm324_vm4, %v326_v31, 0.0  ;;  %v331_v41 = vrot.slane %v330_v35, 4 }
  0x68   : > { %v337_v39 = vsel %vm270_vm1, %v329_v33, 0.0  ;;  %v412_v25 = vsel %vm392_vm5, %v405_v19, 0.0  ;;  %v413_v27 = vsel %vm392_vm5, %v409_v20, 0.0 }
  0x69   : > { %v338_v44 = vrot.slane %v337_v39, 4  ;;  %v332_v47 = vadd.f32 %v331_v41, %v330_v35  ;;  %v414_v1 = vadd.f32 %v413_v27, %v412_v25 }
  0x6b   : > { %v339_v50 = vadd.f32 %v338_v44, %v337_v39  ;;  %v333_v53 = vrot.slane %v332_v47, 2 }
  0x6d   : > { %v340_v56 = vrot.slane %v339_v50, 2  ;;  %v334_v58 = vadd.f32 %v333_v53, %v332_v47 }
  0x6f   : > { %v341_v59 = vadd.f32 %v340_v56, %v339_v50  ;;  %v335_v60 = vrot.slane %v334_v58, 1 }
  0x71   : > { %v621_v34 = vpop.eup %620  ;;  %v342_v61 = vrot.slane %v341_v59, 1  ;;  %v336_v0 = vadd.f32 %v335_v60, %v334_v58 }
  0x72   : > { %v293_v36 = vcombine.high %v621_v34, %v621_v34  ;;  %v295_v37 = vsel %vm270_vm1, %v621_v34, 0.0 }
  0x73   : > { %v296_v38 = vrot.slane %v295_v37, 4  ;;  %v343_v5 = vadd.f32 %v342_v61, %v341_v59 }
  0x74   : > { %v302_v40 = vsel %vm270_vm1, %v293_v36, 0.0 }
  0x75   : > { %v297_v42 = vadd.f32 %v296_v38, %v295_v37  ;;  %v303_v43 = vrot.slane %v302_v40, 4 }
  0x77   : > { %v298_v45 = vrot.slane %v297_v42, 2  ;;  %v304_v46 = vadd.f32 %v303_v43, %v302_v40 }
  0x79   : > { %v299_v48 = vadd.f32 %v298_v45, %v297_v42  ;;  %v305_v49 = vrot.slane %v304_v46, 2 }
  0x7b   : > { %v300_v51 = vrot.slane %v299_v48, 1  ;;  %v306_v52 = vadd.f32 %v305_v49, %v304_v46 }
  0x7d   : > { %v301_v54 = vadd.f32 %v300_v51, %v299_v48  ;;  %v307_v55 = vrot.slane %v306_v52, 1 }
  0x7f   : > { %v308_v57 = vadd.f32 %v307_v55, %v306_v52  ;;  %622 = vlog2.f32 %v301_v54 }
  0x81   : > { %624 = vlog2.f32 %v308_v57 }
  0x89   : > { %v623_v2 = vpop.eup %622 }
  0x8a   : > { %v310_v3 = vmul.f32 0.6931472, %v623_v2 }
  0x8b   : > { %v625_v7 = vpop.eup %624 }
  0x8c   : > { %v312_v8 = vmul.f32 0.6931472, %v625_v7  ;;  %v345_v9 = vsub.f32 %v310_v3, %v336_v0 }
  0x8e   : > { %v346_v10 = vsub.f32 %v312_v8, %v343_v5 }
  0x90   : > { %v349_v12 = vcombine.low %v345_v9, %v346_v10 }
  0x92   : > { %v356_v13 = vrot.slane %v349_v12, %v355_v11 }
  0x94   : > { %v363_v15 = vrot.slane %v356_v13, %v355_v11 }
  0x96   : > { %v365_v16 = vsel %vm266_vm2, %v363_v15, 0.0 }
  0x97   : > { %v366_v17 = vadd.f32 %v365_v16, %v344_v14 }
  0x99   : > { %371 = vst.msk [vmem:[#allocation2] sm:$0x3] %vm909_vm0, %v366_v17 }
  0xa0   : > { %v380_v21 = vld [vmem:[#allocation2] sm:$0x3] }
  0xa1   : > { %v385_v22 = vrot.slane %v380_v21, %v926_v26  ;;  %v389_v23 = vrot.slane %v380_v21, %v928_v28 }
  0xa3   : > { %v393_v24 = vsel %vm392_vm5, %v385_v22, 0.0  ;;  %v394_v4 = vsel %vm392_vm5, %v389_v23, 0.0 }
  0xa4   : > { %v395_v29 = vadd.f32 %v394_v4, %v393_v24 }
  0xa6   : > { %396 = vadd.xlane.f32.xlu0 %v395_v29 }
  0xaa   : > { %415 = vadd.xlane.f32.xlu0 %v414_v1 }
 0x133   : > { %v397_v30 = vpop.xlane.xlu0 %396 }
 0x134   : > { %399 = vst.msk [vmem:[%s250_s9] sm:$0x1] %vm398_vm6, %v397_v30 }
 0x137   : > { %v416_v26 = vpop.xlane.xlu0 %415 }
 0x138   : > { %417 = vst.msk [vmem:[%s253_s12] sm:$0x1] %vm398_vm6, %v416_v26 }
 0x139 PF: > { %s20_s17 = sadd.s32 1, %s740_s17   ;;  %s987_s12 = smov %s724_s13 }
 0x13a   : > { %p17_p9 = scmp.ge.s32.totalorder %s20_s17, 4   ;;  %s988_s13 = smov %s728_s14 }
 0x13b   : > { %s989_s14 = smov %s815_s24  ;;  %s990_s15 = smov %s736_s16 }
 0x13c   : > { %s991_s16 = smov %s993_s19  ;;  %19 = sbr.rel (!%p17_p9) target bundleno = 6 (0x6), region = 101 }
 0x143   :  { %447 = vsyncpa [#allocation5], 1 }
 0x144   :  { %449 = vsyncpa [#allocation5 + $0x1], 1 }
 0x145   :  { %450 = vsyncpa [#allocation7], 1 }
 0x146   :  { %452 = vsyncpa [#allocation7 + $0x1], 1 }

</bundles_post_ra>
